<compile_context>
chip_gen: v7x
topology: tpu7x:2x2x1
jax: 0.10.0
libtpu: 0.0.40
codegen_flags: <defaults>
</compile_context>

<pallas_src>
import jax
import jax.numpy as jnp
from jax.experimental import pallas as pl
from jax.experimental.pallas import tpu as pltpu


_LANE = 128                           # TPU lane width
_SUBLANE_PACK = 32                    # covers f32(8) / bf16(16) / int8(32) packing
_TARGET_TILE_BYTES = 4 * 1024 * 1024  # ~4 MiB per x/out tile
_PALLAS_MIN_BYTES = 256 * 1024        # below this, plain XLA add is faster
_VMEM_LIMIT_BYTES = 48 * 1024 * 1024  # safe on v5e/v6e (128 MiB) and v7x (64 MiB)


def _add_kernel(x_ref, b_ref, o_ref):
    # b_ref is (1, tn) (broadcast over sublanes) or (tm, 1) (broadcast over lanes)
    o_ref[...] = x_ref[...] + b_ref[...]


def _pick_blocks(m, n, itemsize):
    """Pick (tm, tn) so one tile is ~_TARGET_TILE_BYTES and lane-dense."""
    target_elems = _TARGET_TILE_BYTES // itemsize
    # Lane (last-dim) block: full extent when it still leaves >= 32 rows in the
    # byte budget (or when n is too small to tile on 128), else the largest
    # multiple of 128 that does.
    if n * _SUBLANE_PACK <= target_elems or n <= _LANE:
        tn = n
    else:
        tn = max(_LANE, (min(n, target_elems // _SUBLANE_PACK) // _LANE) * _LANE)
    # Sublane block: fill the remaining budget, multiple of 32 (or full extent).
    rows = max(1, target_elems // tn)
    if rows >= m:
        tm = m
    else:
        tm = max(_SUBLANE_PACK, (rows // _SUBLANE_PACK) * _SUBLANE_PACK)
    return tm, tn


def _pallas_add_bias(x2, b2, *, bias_is_row):
    """x2: (M, N).  b2: (1, N) if bias_is_row else (M, 1)."""
    m, n = x2.shape
    itemsize = jnp.dtype(x2.dtype).itemsize
    tm, tn = _pick_blocks(m, n, itemsize)
    grid = (pl.cdiv(m, tm), pl.cdiv(n, tn))

    if bias_is_row:
        b_spec = pl.BlockSpec((1, tn), lambda i, j: (0, j))
    else:
        b_spec = pl.BlockSpec((tm, 1), lambda i, j: (i, 0))

    cost = pl.CostEstimate(
        flops=m * n,
        transcendentals=0,
        bytes_accessed=2 * m * n * itemsize + int(b2.size) * itemsize,
    )

    return pl.pallas_call(
        _add_kernel,
        out_shape=jax.ShapeDtypeStruct((m, n), x2.dtype),
        grid=grid,
        in_specs=[pl.BlockSpec((tm, tn), lambda i, j: (i, j)), b_spec],
        out_specs=pl.BlockSpec((tm, tn), lambda i, j: (i, j)),
        compiler_params=pltpu.CompilerParams(
            dimension_semantics=("parallel", "parallel"),
            vmem_limit_bytes=_VMEM_LIMIT_BYTES,
        ),
        cost_estimate=cost,
    )(x2, b2)


class AddBias:
    """JAX/Pallas port of the PyTorch AddBias module (forward only)."""

    def __init__(self, bias):
        # matches nn.Parameter(bias.unsqueeze(1)): stored as (C, 1)
        self._bias = jnp.asarray(bias).reshape(-1, 1)

    def __call__(self, x):
        c = self._bias.shape[0]
        nbytes = int(x.size) * jnp.dtype(x.dtype).itemsize

        if x.ndim == 2:
            bias_row = self._bias.reshape(1, c).astype(x.dtype)
            if nbytes < _PALLAS_MIN_BYTES:
                return x + bias_row  # tiny: XLA fusion beats kernel launch cost
            # channel axis already on lanes; bias broadcasts over rows
            return _pallas_add_bias(x, bias_row, bias_is_row=True)

        elif x.ndim == 4:
            n, cc, h, w = x.shape
            assert cc == c, f"channel mismatch: {cc} vs {c}"
            if nbytes < _PALLAS_MIN_BYTES:
                return x + self._bias.reshape(1, c, 1, 1).astype(x.dtype)
            # NCHW is contiguous as (N*C, H*W): no transpose, H*W on lanes.
            x2 = x.reshape(n * c, h * w)
            b_col = (
                jnp.broadcast_to(self._bias.reshape(1, c), (n, c))
                .reshape(n * c, 1)
                .astype(x.dtype)
            )
            y2 = _pallas_add_bias(x2, b_col, bias_is_row=False)
            return y2.reshape(n, c, h, w)

        raise ValueError(f"unsupported rank: {x.ndim}")


if __name__ == "__main__":
    key = jax.random.PRNGKey(0)
    k_b4, k_b2, k1, k2, k3, k4, k5, k6 = jax.random.split(key, 8)

    # ---------------- module with C=4 (matches PyTorch demo) ----------------
    C = 4
    bias4 = jax.random.normal(k_b4, (C,), dtype=jnp.float32)
    mod4 = AddBias(bias4)

    # small 4-D NCHW (tiny -> XLA fast path)
    x_small4 = jax.random.normal(k1, (2, C, 16, 16), dtype=jnp.float32)
    y = mod4(x_small4)
    jax.block_until_ready(y)
    assert y.shape == x_small4.shape and y.dtype == x_small4.dtype
    assert jnp.allclose(y, x_small4 + bias4.reshape(1, C, 1, 1), atol=1e-6), "small 4D"

    # small 2-D (tiny -> XLA fast path)
    x_small2 = jax.random.normal(k2, (2, C), dtype=jnp.float32)
    y = mod4(x_small2)
    jax.block_until_ready(y)
    assert jnp.allclose(y, x_small2 + bias4.reshape(1, C), atol=1e-6), "small 2D"

    # 4-D NCHW -> Pallas row-bias kernel on the (N*C, H*W) slab, grid (1,1)
    x_big4 = jax.random.normal(k3, (2, C, 128, 128), dtype=jnp.float32)
    y = mod4(x_big4)
    jax.block_until_ready(y)
    assert jnp.allclose(y, x_big4 + bias4.reshape(1, C, 1, 1), atol=1e-6), "big 4D"

    # odd-shaped 4-D: full-extent (non-128-aligned) blocks
    x_odd4 = jax.random.normal(k4, (3, C, 100, 77), dtype=jnp.float32)
    y = mod4(x_odd4)
    jax.block_until_ready(y)
    assert jnp.allclose(y, x_odd4 + bias4.reshape(1, C, 1, 1), atol=1e-6), "odd 4D"

    # 4-D large enough to force a multi-step grid with a partial lane block
    x_multi4 = jax.random.normal(k5, (4, C, 256, 320), dtype=jnp.float32)
    y = mod4(x_multi4)
    jax.block_until_ready(y)
    assert jnp.allclose(y, x_multi4 + bias4.reshape(1, C, 1, 1), atol=1e-6), "multi 4D"

    # ------------- module with C=512: 2-D Pallas column-bias kernel ----------
    C2 = 512
    bias512 = jax.random.normal(k_b2, (C2,), dtype=jnp.float32)
    mod512 = AddBias(bias512)
    x_big2 = jax.random.normal(k6, (4096, C2), dtype=jnp.float32)
    y = mod512(x_big2)
    jax.block_until_ready(y)
    assert jnp.allclose(y, x_big2 + bias512.reshape(1, C2), atol=1e-6), "big 2D"

    print("KERNEL_OK")
</pallas_src>

<mosaic_0001>
module attributes {stable_mosaic.version = 11 : i64} {
  func.func @_add_kernel(%arg0: i32, %arg1: i32, %arg2: memref<8x16384xf32, #tpu.memory_space<vmem>>, %arg3: memref<8x1xf32, #tpu.memory_space<vmem>>, %arg4: memref<8x16384xf32, #tpu.memory_space<vmem>>) attributes {dimension_semantics = [#tpu.dimension_semantics<parallel>, #tpu.dimension_semantics<parallel>], iteration_bounds = array<i64: 1, 1>, scalar_prefetch = 0 : i64, scratch_operands = 0 : i64, tpu.core_type = #tpu.core_type<tc>, window_params = [{transform_indices = @transform_0, window_bounds = array<i64: 8, 16384>}, {transform_indices = @transform_1, window_bounds = array<i64: 8, 1>}, {transform_indices = @transform_2, window_bounds = array<i64: 8, 16384>}]} {
    %c0 = arith.constant 0 : index
    %c0_0 = arith.constant 0 : index
    %0 = vector.load %arg2[%c0, %c0_0] : memref<8x16384xf32, #tpu.memory_space<vmem>>, vector<8x16384xf32>
    %c0_1 = arith.constant 0 : index
    %c0_2 = arith.constant 0 : index
    %1 = vector.load %arg3[%c0_1, %c0_2] : memref<8x1xf32, #tpu.memory_space<vmem>>, vector<8x1xf32>
    %2 = vector.broadcast %1 : vector<8x1xf32> to vector<8x16384xf32>
    %3 = arith.addf %0, %2 : vector<8x16384xf32>
    %c0_3 = arith.constant 0 : index
    %c0_4 = arith.constant 0 : index
    %4 = vector.load %arg4[%c0_3, %c0_4] : memref<8x16384xf32, #tpu.memory_space<vmem>>, vector<8x16384xf32>
    tpu.vector_store %arg4[%c0_3, %c0_4], %3 {strides = array<i32>} : memref<8x16384xf32, #tpu.memory_space<vmem>>, vector<8x16384xf32>,
    return
  }
  func.func @transform_0(%arg0: i32, %arg1: i32) -> (i32, i32) {
    %c0_i32 = arith.constant 0 : i32
    return %arg0, %arg1 : i32, i32
  }
  func.func @transform_1(%arg0: i32, %arg1: i32) -> (i32, i32) {
    %c0_i32 = arith.constant 0 : i32
    %c0_i32_0 = arith.constant 0 : i32
    return %arg0, %c0_i32 : i32, i32
  }
  func.func @transform_2(%arg0: i32, %arg1: i32) -> (i32, i32) {
    %c0_i32 = arith.constant 0 : i32
    return %arg0, %arg1 : i32, i32
  }
}

</mosaic_0001>

<bundles_post_ra>
// kernel: tpu_custom_call.1
= control target key start
LH: loop header
LB: loop body
LE: loop exit
PB: predicated region body
PF: predicated region fallthrough
CT: control target
= control target key end

     0   :  { %7 = vsyncpa [#allocation3], 0  ;;  %s836_s0 = inlined_call_operand.hbm [shape: f32[8,16384], index: 0, kind: input, shape index: {}]   ;;  %s837_s1 = inlined_call_operand.vmem [shape: f32[8,1], index: 1, kind: input, shape index: {}]   ;;  %s838_s2 = inlined_call_operand.hbm [shape: f32[8,16384], index: 2, kind: output, shape index: {}]  }
   0x1   :  { %8 = vsyncpa [#allocation4], 0  ;;  %s481_s9 = smov [#allocation2]   ;;  %s433_s13 = scalar_lea.hbm %s836_s0, 16384 }
   0x2   :  { %s15_s10 = sshll.u32 %s481_s9, 4  ;;  %p434_p0 = scmp.ne.s32.totalorder %s836_s0, %s433_s13  ;;  %s16_s10 = int_to_ptr.vmem [resolvable:$true] %s15_s10 }
   0x3   :  { %p437_p1 = scmp.lt.u32.totalorder %s433_s13, %s836_s0 }
   0x5   :  { %p439_p2 = pnand %p437_p1, %p434_p0 }
   0x7   :  { %442 = shalt.err (!%p439_p2)
}
   0x8   :  { %s443_s18 = scalar_lea.vmem %s16_s10, 16384  ;;  %p448_p4 = scmp.lt.s32.totalorder %s16_s10, %s16_s10 }
   0x9   :  { %p444_p3 = scmp.ne.s32.totalorder %s16_s10, %s443_s18  ;;  %p449_p5 = scmp.lt.s32.totalorder %s443_s18, %s443_s18 }
   0xb   :  { %p450_p6 = por %p449_p5, %p448_p4 }
   0xd   :  { %p451_p7 = pnand %p450_p6, %p444_p3 }
   0xf   :  { %454 = shalt.err (!%p451_p7)
}
  0x10   :  { %18 = dma.hbm_to_vmem [thread:$0]  %s836_s0, 16384, %s16_s10, [#allocation3]  }
  0x11   :  { %477 = dma.done.wait [#allocation3], 16384  }
  0x12   :  { %478 = vsyncadd [#allocation3], 4294950912  ;;  %v482_v0 = vmov 0   ;;  %v152_v1 = vld [vmem:[%s837_s1] sm:$0xff]  ;;  %v25_v3 = vld [vmem:[#allocation2 + $0x8] sm:$0xff]  ;;  %s483_s0 = smov [#allocation5]  }
  0x13   :  { %432 = vset.pattern.permute.xlu0 %v482_v0  ;;  %v24_v2 = vld [vmem:[#allocation2] sm:$0xff]  ;;  %v26_v4 = vld [vmem:[#allocation2 + $0x10] sm:$0xff]  ;;  %v27_v5 = vld [vmem:[#allocation2 + $0x18] sm:$0xff]  ;;  %s420_s1 = sshll.u32 %s483_s0, 4  ;;  %s421_s1 = int_to_ptr.vmem [resolvable:$true] %s420_s1 }
  0x14   :  { %155 = vperm.xlu0 %432, %v152_v1   ;;  %v28_v6 = vld [vmem:[#allocation2 + $0x20] sm:$0xff]  ;;  %v29_v7 = vld [vmem:[#allocation2 + $0x28] sm:$0xff]  ;;  %v30_v8 = vld [vmem:[#allocation2 + $0x30] sm:$0xff]  ;;  %s455_s23 = scalar_lea.vmem %s421_s1, 16384  ;;  %p460_p9 = scmp.lt.s32.totalorder %s421_s1, %s421_s1 }
  0x15   :  { %v31_v9 = vld [vmem:[#allocation2 + $0x38] sm:$0xff]  ;;  %v32_v10 = vld [vmem:[#allocation2 + $0x40] sm:$0xff]  ;;  %v33_v11 = vld [vmem:[#allocation2 + $0x48] sm:$0xff]  ;;  %p456_p8 = scmp.ne.s32.totalorder %s421_s1, %s455_s23  ;;  %p461_p10 = scmp.lt.s32.totalorder %s455_s23, %s455_s23 }
  0x16   :  { %v34_v12 = vld [vmem:[#allocation2 + $0x50] sm:$0xff]  ;;  %v35_v13 = vld [vmem:[#allocation2 + $0x58] sm:$0xff]  ;;  %v36_v14 = vld [vmem:[#allocation2 + $0x60] sm:$0xff] }
  0x17   :  { %v37_v15 = vld [vmem:[#allocation2 + $0x68] sm:$0xff]  ;;  %v38_v16 = vld [vmem:[#allocation2 + $0x70] sm:$0xff]  ;;  %v39_v17 = vld [vmem:[#allocation2 + $0x78] sm:$0xff]  ;;  %p462_p11 = por %p461_p10, %p460_p9 }
  0x18   :  { %v40_v19 = vld [vmem:[#allocation2 + $0x80] sm:$0xff]  ;;  %v41_v20 = vld [vmem:[#allocation2 + $0x88] sm:$0xff]  ;;  %v42_v21 = vld [vmem:[#allocation2 + $0x90] sm:$0xff] }
  0x19   :  { %v43_v22 = vld [vmem:[#allocation2 + $0x98] sm:$0xff]  ;;  %v44_v23 = vld [vmem:[#allocation2 + $0xa0] sm:$0xff]  ;;  %v45_v24 = vld [vmem:[#allocation2 + $0xa8] sm:$0xff]  ;;  %p463_p12 = pnand %p462_p11, %p456_p8 }
  0x1a   :  { %v46_v25 = vld [vmem:[#allocation2 + $0xb0] sm:$0xff]  ;;  %v47_v26 = vld [vmem:[#allocation2 + $0xb8] sm:$0xff]  ;;  %v48_v31 = vld [vmem:[#allocation2 + $0xc0] sm:$0xff] }
  0x1b   :  { %v49_v32 = vld [vmem:[#allocation2 + $0xc8] sm:$0xff]  ;;  %v50_v33 = vld [vmem:[#allocation2 + $0xd0] sm:$0xff]  ;;  %v51_v34 = vld [vmem:[#allocation2 + $0xd8] sm:$0xff] }
  0x1c   :  { %v524_v39 = vld [vmem:[#allocation2 + $0xe0] sm:$0xff]  ;;  %v526_v40 = vld [vmem:[#allocation2 + $0xe8] sm:$0xff]  ;;  %v528_v41 = vld [vmem:[#allocation2 + $0xf0] sm:$0xff] }
  0x1d   :  { %v530_v42 = vld [vmem:[#allocation2 + $0xf8] sm:$0xff]  ;;  %v536_v47 = vld [vmem:[#allocation2 + $0x100] sm:$0xff]  ;;  %v538_v48 = vld [vmem:[#allocation2 + $0x108] sm:$0xff] }
  0x1e   :  { %v540_v49 = vld [vmem:[#allocation2 + $0x110] sm:$0xff]  ;;  %v542_v50 = vld [vmem:[#allocation2 + $0x118] sm:$0xff]  ;;  %v548_v55 = vld [vmem:[#allocation2 + $0x120] sm:$0xff] }
  0x1f   :  { %v550_v56 = vld [vmem:[#allocation2 + $0x128] sm:$0xff]  ;;  %v552_v57 = vld [vmem:[#allocation2 + $0x130] sm:$0xff]  ;;  %v554_v58 = vld [vmem:[#allocation2 + $0x138] sm:$0xff] }
  0x20   :  { %v560_v63 = vld [vmem:[#allocation2 + $0x140] sm:$0xff]  ;;  %v562_v0 = vld [vmem:[#allocation2 + $0x148] sm:$0xff]  ;;  %v564_v1 = vld [vmem:[#allocation2 + $0x150] sm:$0xff] }
  0x93   :  { %v514_v18 = vpop.permute.xlu0 %155 }
  0x94   :  { %v158_v27 = vadd.f32 %v514_v18, %v24_v2  ;;  %v159_v28 = vadd.f32 %v514_v18, %v25_v3  ;;  %v160_v29 = vadd.f32 %v514_v18, %v26_v4  ;;  %v161_v30 = vadd.f32 %v514_v18, %v27_v5  ;;  %v566_v2 = vld [vmem:[#allocation2 + $0x158] sm:$0xff] }
  0x95   :  { %v162_v35 = vadd.f32 %v514_v18, %v28_v6  ;;  %v163_v36 = vadd.f32 %v514_v18, %v29_v7  ;;  %v164_v37 = vadd.f32 %v514_v18, %v30_v8  ;;  %v165_v38 = vadd.f32 %v514_v18, %v31_v9  ;;  %v572_v7 = vld [vmem:[#allocation2 + $0x160] sm:$0xff]  ;;  %v574_v8 = vld [vmem:[#allocation2 + $0x168] sm:$0xff]  ;;  %v576_v9 = vld [vmem:[#allocation2 + $0x170] sm:$0xff] }
  0x96   :  { %v166_v43 = vadd.f32 %v514_v18, %v32_v10  ;;  %v167_v44 = vadd.f32 %v514_v18, %v33_v11  ;;  %v168_v45 = vadd.f32 %v514_v18, %v34_v12  ;;  %v169_v46 = vadd.f32 %v514_v18, %v35_v13  ;;  %286 = vst [vmem:[#allocation5] sm:$0xff] %v158_v27  ;;  %v578_v10 = vld [vmem:[#allocation2 + $0x178] sm:$0xff] }
  0x97   :  { %287 = vst [vmem:[#allocation5 + $0x8] sm:$0xff] %v159_v28  ;;  %288 = vst [vmem:[#allocation5 + $0x10] sm:$0xff] %v160_v29  ;;  %v170_v51 = vadd.f32 %v514_v18, %v36_v14  ;;  %v171_v52 = vadd.f32 %v514_v18, %v37_v15  ;;  %v172_v53 = vadd.f32 %v514_v18, %v38_v16  ;;  %v584_v15 = vld [vmem:[#allocation2 + $0x180] sm:$0xff]  ;;  %v586_v16 = vld [vmem:[#allocation2 + $0x188] sm:$0xff] }
  0x98   :  { %289 = vst [vmem:[#allocation5 + $0x18] sm:$0xff] %v161_v30  ;;  %v173_v54 = vadd.f32 %v514_v18, %v39_v17  ;;  %290 = vst [vmem:[#allocation5 + $0x20] sm:$0xff] %v162_v35  ;;  %v174_v59 = vadd.f32 %v514_v18, %v40_v19  ;;  %v175_v60 = vadd.f32 %v514_v18, %v41_v20  ;;  %v588_v17 = vld [vmem:[#allocation2 + $0x190] sm:$0xff]  ;;  %v590_v19 = vld [vmem:[#allocation2 + $0x198] sm:$0xff] }
  0x99   :  { %291 = vst [vmem:[#allocation5 + $0x28] sm:$0xff] %v163_v36  ;;  %292 = vst [vmem:[#allocation5 + $0x30] sm:$0xff] %v164_v37  ;;  %v176_v61 = vadd.f32 %v514_v18, %v42_v21  ;;  %v177_v62 = vadd.f32 %v514_v18, %v43_v22  ;;  %v178_v3 = vadd.f32 %v514_v18, %v44_v23  ;;  %v606_v27 = vld [vmem:[#allocation2 + $0x1b8] sm:$0xff] }
  0x9a   :  { %293 = vst [vmem:[#allocation5 + $0x38] sm:$0xff] %v165_v38  ;;  %294 = vst [vmem:[#allocation5 + $0x40] sm:$0xff] %v166_v43  ;;  %v179_v4 = vadd.f32 %v514_v18, %v45_v24  ;;  %v180_v5 = vadd.f32 %v514_v18, %v46_v25  ;;  %v181_v6 = vadd.f32 %v514_v18, %v47_v26  ;;  %v600_v24 = vld [vmem:[#allocation2 + $0x1a0] sm:$0xff]  ;;  %v602_v25 = vld [vmem:[#allocation2 + $0x1a8] sm:$0xff] }
  0x9b   :  { %295 = vst [vmem:[#allocation5 + $0x48] sm:$0xff] %v167_v44  ;;  %296 = vst [vmem:[#allocation5 + $0x50] sm:$0xff] %v168_v45  ;;  %v182_v11 = vadd.f32 %v514_v18, %v48_v31  ;;  %v183_v12 = vadd.f32 %v514_v18, %v49_v32  ;;  %v184_v13 = vadd.f32 %v514_v18, %v50_v33  ;;  %v604_v26 = vld [vmem:[#allocation2 + $0x1b0] sm:$0xff]  ;;  %v616_v32 = vld [vmem:[#allocation2 + $0x1c0] sm:$0xff] }
  0x9c   :  { %297 = vst [vmem:[#allocation5 + $0x58] sm:$0xff] %v169_v46  ;;  %298 = vst [vmem:[#allocation5 + $0x60] sm:$0xff] %v170_v51  ;;  %v185_v14 = vadd.f32 %v514_v18, %v51_v34  ;;  %v186_v20 = vadd.f32 %v514_v18, %v524_v39  ;;  %v187_v21 = vadd.f32 %v514_v18, %v526_v40  ;;  %v618_v33 = vld [vmem:[#allocation2 + $0x1c8] sm:$0xff]  ;;  %v620_v34 = vld [vmem:[#allocation2 + $0x1d0] sm:$0xff] }
  0x9d   :  { %299 = vst [vmem:[#allocation5 + $0x68] sm:$0xff] %v171_v52  ;;  %300 = vst [vmem:[#allocation5 + $0x70] sm:$0xff] %v172_v53  ;;  %v188_v22 = vadd.f32 %v514_v18, %v528_v41  ;;  %v189_v23 = vadd.f32 %v514_v18, %v530_v42  ;;  %v190_v28 = vadd.f32 %v514_v18, %v536_v47  ;;  %v622_v35 = vld [vmem:[#allocation2 + $0x1d8] sm:$0xff]  ;;  %v632_v40 = vld [vmem:[#allocation2 + $0x1e0] sm:$0xff] }
  0x9e   :  { %301 = vst [vmem:[#allocation5 + $0x78] sm:$0xff] %v173_v54  ;;  %302 = vst [vmem:[#allocation5 + $0x80] sm:$0xff] %v174_v59  ;;  %v191_v29 = vadd.f32 %v514_v18, %v538_v48  ;;  %v192_v30 = vadd.f32 %v514_v18, %v540_v49  ;;  %v193_v31 = vadd.f32 %v514_v18, %v542_v50  ;;  %v634_v41 = vld [vmem:[#allocation2 + $0x1e8] sm:$0xff]  ;;  %v636_v42 = vld [vmem:[#allocation2 + $0x1f0] sm:$0xff] }
  0x9f   :  { %303 = vst [vmem:[#allocation5 + $0x88] sm:$0xff] %v175_v60  ;;  %304 = vst [vmem:[#allocation5 + $0x90] sm:$0xff] %v176_v61  ;;  %v194_v36 = vadd.f32 %v514_v18, %v548_v55  ;;  %v195_v37 = vadd.f32 %v514_v18, %v550_v56  ;;  %v196_v38 = vadd.f32 %v514_v18, %v552_v57  ;;  %v638_v43 = vld [vmem:[#allocation2 + $0x1f8] sm:$0xff]  ;;  %v648_v48 = vld [vmem:[#allocation2 + $0x200] sm:$0xff] }
  0xa0   :  { %305 = vst [vmem:[#allocation5 + $0x98] sm:$0xff] %v177_v62  ;;  %306 = vst [vmem:[#allocation5 + $0xa0] sm:$0xff] %v178_v3  ;;  %v197_v39 = vadd.f32 %v514_v18, %v554_v58  ;;  %v198_v44 = vadd.f32 %v514_v18, %v560_v63  ;;  %v199_v45 = vadd.f32 %v514_v18, %v562_v0  ;;  %v650_v49 = vld [vmem:[#allocation2 + $0x208] sm:$0xff]  ;;  %v652_v50 = vld [vmem:[#allocation2 + $0x210] sm:$0xff] }
  0xa1   :  { %307 = vst [vmem:[#allocation5 + $0xa8] sm:$0xff] %v179_v4  ;;  %308 = vst [vmem:[#allocation5 + $0xb0] sm:$0xff] %v180_v5  ;;  %v200_v46 = vadd.f32 %v514_v18, %v564_v1  ;;  %v201_v47 = vadd.f32 %v514_v18, %v566_v2  ;;  %v654_v51 = vld [vmem:[#allocation2 + $0x218] sm:$0xff]  ;;  %v202_v52 = vadd.f32 %v514_v18, %v572_v7  ;;  %v664_v56 = vld [vmem:[#allocation2 + $0x220] sm:$0xff] }
  0xa2   :  { %309 = vst [vmem:[#allocation5 + $0xb8] sm:$0xff] %v181_v6  ;;  %310 = vst [vmem:[#allocation5 + $0xc0] sm:$0xff] %v182_v11  ;;  %v203_v53 = vadd.f32 %v514_v18, %v574_v8  ;;  %v204_v54 = vadd.f32 %v514_v18, %v576_v9  ;;  %v205_v55 = vadd.f32 %v514_v18, %v578_v10  ;;  %v666_v57 = vld [vmem:[#allocation2 + $0x228] sm:$0xff]  ;;  %v668_v58 = vld [vmem:[#allocation2 + $0x230] sm:$0xff] }
  0xa3   :  { %311 = vst [vmem:[#allocation5 + $0xc8] sm:$0xff] %v183_v12  ;;  %312 = vst [vmem:[#allocation5 + $0xd0] sm:$0xff] %v184_v13  ;;  %v670_v59 = vld [vmem:[#allocation2 + $0x238] sm:$0xff]  ;;  %v206_v60 = vadd.f32 %v514_v18, %v584_v15  ;;  %v207_v61 = vadd.f32 %v514_v18, %v586_v16  ;;  %v208_v62 = vadd.f32 %v514_v18, %v588_v17  ;;  %v680_v0 = vld [vmem:[#allocation2 + $0x240] sm:$0xff] }
  0xa4   :  { %313 = vst [vmem:[#allocation5 + $0xd8] sm:$0xff] %v185_v14  ;;  %314 = vst [vmem:[#allocation5 + $0xe0] sm:$0xff] %v186_v20  ;;  %v209_v63 = vadd.f32 %v514_v18, %v590_v19  ;;  %v682_v1 = vld [vmem:[#allocation2 + $0x248] sm:$0xff]  ;;  %v684_v2 = vld [vmem:[#allocation2 + $0x250] sm:$0xff]  ;;  %v210_v4 = vadd.f32 %v514_v18, %v600_v24  ;;  %v211_v5 = vadd.f32 %v514_v18, %v602_v25 }
  0xa5   :  { %315 = vst [vmem:[#allocation5 + $0xe8] sm:$0xff] %v187_v21  ;;  %316 = vst [vmem:[#allocation5 + $0xf0] sm:$0xff] %v188_v22  ;;  %v686_v3 = vld [vmem:[#allocation2 + $0x258] sm:$0xff]  ;;  %v212_v6 = vadd.f32 %v514_v18, %v604_v26  ;;  %v213_v7 = vadd.f32 %v514_v18, %v606_v27  ;;  %v696_v8 = vld [vmem:[#allocation2 + $0x260] sm:$0xff]  ;;  %v214_v12 = vadd.f32 %v514_v18, %v616_v32 }
  0xa6   :  { %317 = vst [vmem:[#allocation5 + $0xf8] sm:$0xff] %v189_v23  ;;  %318 = vst [vmem:[#allocation5 + $0x100] sm:$0xff] %v190_v28  ;;  %v698_v9 = vld [vmem:[#allocation2 + $0x268] sm:$0xff]  ;;  %v700_v10 = vld [vmem:[#allocation2 + $0x270] sm:$0xff]  ;;  %v215_v13 = vadd.f32 %v514_v18, %v618_v33  ;;  %v216_v14 = vadd.f32 %v514_v18, %v620_v34  ;;  %v217_v15 = vadd.f32 %v514_v18, %v622_v35 }
  0xa7   :  { %319 = vst [vmem:[#allocation5 + $0x108] sm:$0xff] %v191_v29  ;;  %320 = vst [vmem:[#allocation5 + $0x110] sm:$0xff] %v192_v30  ;;  %v702_v11 = vld [vmem:[#allocation2 + $0x278] sm:$0xff]  ;;  %v712_v16 = vld [vmem:[#allocation2 + $0x280] sm:$0xff]  ;;  %v218_v21 = vadd.f32 %v514_v18, %v632_v40  ;;  %v219_v22 = vadd.f32 %v514_v18, %v634_v41  ;;  %v220_v23 = vadd.f32 %v514_v18, %v636_v42 }
  0xa8   :  { %321 = vst [vmem:[#allocation5 + $0x118] sm:$0xff] %v193_v31  ;;  %322 = vst [vmem:[#allocation5 + $0x120] sm:$0xff] %v194_v36  ;;  %v714_v17 = vld [vmem:[#allocation2 + $0x288] sm:$0xff]  ;;  %v716_v19 = vld [vmem:[#allocation2 + $0x290] sm:$0xff]  ;;  %v221_v24 = vadd.f32 %v514_v18, %v638_v43  ;;  %v222_v29 = vadd.f32 %v514_v18, %v648_v48  ;;  %v223_v30 = vadd.f32 %v514_v18, %v650_v49 }
  0xa9   :  { %323 = vst [vmem:[#allocation5 + $0x128] sm:$0xff] %v195_v37  ;;  %324 = vst [vmem:[#allocation5 + $0x130] sm:$0xff] %v196_v38  ;;  %v718_v20 = vld [vmem:[#allocation2 + $0x298] sm:$0xff]  ;;  %v728_v25 = vld [vmem:[#allocation2 + $0x2a0] sm:$0xff]  ;;  %v224_v31 = vadd.f32 %v514_v18, %v652_v50  ;;  %v225_v32 = vadd.f32 %v514_v18, %v654_v51  ;;  %v226_v37 = vadd.f32 %v514_v18, %v664_v56 }
  0xaa   :  { %325 = vst [vmem:[#allocation5 + $0x138] sm:$0xff] %v197_v39  ;;  %326 = vst [vmem:[#allocation5 + $0x140] sm:$0xff] %v198_v44  ;;  %v730_v26 = vld [vmem:[#allocation2 + $0x2a8] sm:$0xff]  ;;  %v732_v27 = vld [vmem:[#allocation2 + $0x2b0] sm:$0xff]  ;;  %v227_v38 = vadd.f32 %v514_v18, %v666_v57  ;;  %v228_v39 = vadd.f32 %v514_v18, %v668_v58  ;;  %v229_v40 = vadd.f32 %v514_v18, %v670_v59 }
  0xab   :  { %327 = vst [vmem:[#allocation5 + $0x148] sm:$0xff] %v199_v45  ;;  %328 = vst [vmem:[#allocation5 + $0x150] sm:$0xff] %v200_v46  ;;  %v734_v28 = vld [vmem:[#allocation2 + $0x2b8] sm:$0xff]  ;;  %v112_v33 = vld [vmem:[#allocation2 + $0x2c0] sm:$0xff]  ;;  %v230_v45 = vadd.f32 %v514_v18, %v680_v0  ;;  %v231_v46 = vadd.f32 %v514_v18, %v682_v1  ;;  %v233_v48 = vadd.f32 %v514_v18, %v686_v3 }
  0xac   :  { %329 = vst [vmem:[#allocation5 + $0x158] sm:$0xff] %v201_v47  ;;  %330 = vst [vmem:[#allocation5 + $0x160] sm:$0xff] %v202_v52  ;;  %v113_v34 = vld [vmem:[#allocation2 + $0x2c8] sm:$0xff]  ;;  %v114_v35 = vld [vmem:[#allocation2 + $0x2d0] sm:$0xff]  ;;  %v232_v47 = vadd.f32 %v514_v18, %v684_v2  ;;  %v237_v56 = vadd.f32 %v514_v18, %v702_v11  ;;  %v241_v0 = vadd.f32 %v514_v18, %v718_v20 }
  0xad   :  { %331 = vst [vmem:[#allocation5 + $0x168] sm:$0xff] %v203_v53  ;;  %332 = vst [vmem:[#allocation5 + $0x170] sm:$0xff] %v204_v54  ;;  %v115_v36 = vld [vmem:[#allocation2 + $0x2d8] sm:$0xff]  ;;  %v116_v41 = vld [vmem:[#allocation2 + $0x2e0] sm:$0xff]  ;;  %v234_v53 = vadd.f32 %v514_v18, %v696_v8  ;;  %v235_v54 = vadd.f32 %v514_v18, %v698_v9  ;;  %v246_v11 = vadd.f32 %v514_v18, %v112_v33 }
  0xae   :  { %333 = vst [vmem:[#allocation5 + $0x178] sm:$0xff] %v205_v55  ;;  %334 = vst [vmem:[#allocation5 + $0x180] sm:$0xff] %v206_v60  ;;  %v117_v42 = vld [vmem:[#allocation2 + $0x2e8] sm:$0xff]  ;;  %v118_v43 = vld [vmem:[#allocation2 + $0x2f0] sm:$0xff]  ;;  %v236_v55 = vadd.f32 %v514_v18, %v700_v10 }
  0xaf   :  { %335 = vst [vmem:[#allocation5 + $0x188] sm:$0xff] %v207_v61  ;;  %336 = vst [vmem:[#allocation5 + $0x190] sm:$0xff] %v208_v62  ;;  %v119_v44 = vld [vmem:[#allocation2 + $0x2f8] sm:$0xff]  ;;  %v120_v49 = vld [vmem:[#allocation2 + $0x300] sm:$0xff]  ;;  %v238_v61 = vadd.f32 %v514_v18, %v712_v16  ;;  %v239_v62 = vadd.f32 %v514_v18, %v714_v17  ;;  %v251_v20 = vadd.f32 %v514_v18, %v117_v42 }
  0xb0   :  { %337 = vst [vmem:[#allocation5 + $0x198] sm:$0xff] %v209_v63  ;;  %338 = vst [vmem:[#allocation5 + $0x1a0] sm:$0xff] %v210_v4  ;;  %v121_v50 = vld [vmem:[#allocation2 + $0x308] sm:$0xff]  ;;  %v122_v51 = vld [vmem:[#allocation2 + $0x310] sm:$0xff]  ;;  %v240_v63 = vadd.f32 %v514_v18, %v716_v19  ;;  %v242_v4 = vadd.f32 %v514_v18, %v728_v25  ;;  %v250_v19 = vadd.f32 %v514_v18, %v116_v41 }
  0xb1   :  { %339 = vst [vmem:[#allocation5 + $0x1a8] sm:$0xff] %v211_v5  ;;  %340 = vst [vmem:[#allocation5 + $0x1b0] sm:$0xff] %v212_v6  ;;  %v123_v52 = vld [vmem:[#allocation2 + $0x318] sm:$0xff]  ;;  %v124_v57 = vld [vmem:[#allocation2 + $0x320] sm:$0xff]  ;;  %v243_v5 = vadd.f32 %v514_v18, %v730_v26  ;;  %v244_v6 = vadd.f32 %v514_v18, %v732_v27  ;;  %v254_v26 = vadd.f32 %v514_v18, %v120_v49 }
  0xb2   :  { %341 = vst [vmem:[#allocation5 + $0x1b8] sm:$0xff] %v213_v7  ;;  %342 = vst [vmem:[#allocation5 + $0x1c0] sm:$0xff] %v214_v12  ;;  %v125_v58 = vld [vmem:[#allocation2 + $0x328] sm:$0xff]  ;;  %v126_v59 = vld [vmem:[#allocation2 + $0x330] sm:$0xff]  ;;  %v245_v7 = vadd.f32 %v514_v18, %v734_v28  ;;  %v247_v12 = vadd.f32 %v514_v18, %v113_v34  ;;  %v255_v27 = vadd.f32 %v514_v18, %v121_v50 }
  0xb3   :  { %343 = vst [vmem:[#allocation5 + $0x1c8] sm:$0xff] %v215_v13  ;;  %344 = vst [vmem:[#allocation5 + $0x1d0] sm:$0xff] %v216_v14  ;;  %v127_v60 = vld [vmem:[#allocation2 + $0x338] sm:$0xff]  ;;  %v128_v1 = vld [vmem:[#allocation2 + $0x340] sm:$0xff]  ;;  %v248_v13 = vadd.f32 %v514_v18, %v114_v35  ;;  %v249_v14 = vadd.f32 %v514_v18, %v115_v36  ;;  %v256_v28 = vadd.f32 %v514_v18, %v122_v51 }
  0xb4   :  { %345 = vst [vmem:[#allocation5 + $0x1d8] sm:$0xff] %v217_v15  ;;  %346 = vst [vmem:[#allocation5 + $0x1e0] sm:$0xff] %v218_v21  ;;  %v129_v2 = vld [vmem:[#allocation2 + $0x348] sm:$0xff]  ;;  %v130_v3 = vld [vmem:[#allocation2 + $0x350] sm:$0xff]  ;;  %v252_v21 = vadd.f32 %v514_v18, %v118_v43  ;;  %v258_v33 = vadd.f32 %v514_v18, %v124_v57  ;;  %v259_v34 = vadd.f32 %v514_v18, %v125_v58 }
  0xb5   :  { %347 = vst [vmem:[#allocation5 + $0x1e8] sm:$0xff] %v219_v22  ;;  %348 = vst [vmem:[#allocation5 + $0x1f0] sm:$0xff] %v220_v23  ;;  %v131_v8 = vld [vmem:[#allocation2 + $0x358] sm:$0xff]  ;;  %v132_v9 = vld [vmem:[#allocation2 + $0x360] sm:$0xff]  ;;  %v253_v22 = vadd.f32 %v514_v18, %v119_v44  ;;  %v260_v35 = vadd.f32 %v514_v18, %v126_v59  ;;  %v261_v36 = vadd.f32 %v514_v18, %v127_v60 }
  0xb6   :  { %349 = vst [vmem:[#allocation5 + $0x1f8] sm:$0xff] %v221_v24  ;;  %350 = vst [vmem:[#allocation5 + $0x200] sm:$0xff] %v222_v29  ;;  %v133_v10 = vld [vmem:[#allocation2 + $0x368] sm:$0xff]  ;;  %v134_v15 = vld [vmem:[#allocation2 + $0x370] sm:$0xff]  ;;  %v257_v29 = vadd.f32 %v514_v18, %v123_v52  ;;  %v263_v41 = vadd.f32 %v514_v18, %v129_v2  ;;  %v264_v42 = vadd.f32 %v514_v18, %v130_v3 }
  0xb7   :  { %351 = vst [vmem:[#allocation5 + $0x208] sm:$0xff] %v223_v30  ;;  %352 = vst [vmem:[#allocation5 + $0x210] sm:$0xff] %v224_v31  ;;  %v135_v16 = vld [vmem:[#allocation2 + $0x378] sm:$0xff]  ;;  %v136_v17 = vld [vmem:[#allocation2 + $0x380] sm:$0xff]  ;;  %v265_v43 = vadd.f32 %v514_v18, %v131_v8  ;;  %v268_v49 = vadd.f32 %v514_v18, %v134_v15 }
  0xb8   :  { %353 = vst [vmem:[#allocation5 + $0x218] sm:$0xff] %v225_v32  ;;  %354 = vst [vmem:[#allocation5 + $0x220] sm:$0xff] %v226_v37  ;;  %v137_v23 = vld [vmem:[#allocation2 + $0x388] sm:$0xff]  ;;  %v138_v24 = vld [vmem:[#allocation2 + $0x390] sm:$0xff]  ;;  %v269_v50 = vadd.f32 %v514_v18, %v135_v16 }
  0xb9   :  { %355 = vst [vmem:[#allocation5 + $0x228] sm:$0xff] %v227_v38  ;;  %356 = vst [vmem:[#allocation5 + $0x230] sm:$0xff] %v228_v39  ;;  %v139_v25 = vld [vmem:[#allocation2 + $0x398] sm:$0xff]  ;;  %v140_v30 = vld [vmem:[#allocation2 + $0x3a0] sm:$0xff] }
  0xba   :  { %357 = vst [vmem:[#allocation5 + $0x238] sm:$0xff] %v229_v40  ;;  %358 = vst [vmem:[#allocation5 + $0x240] sm:$0xff] %v230_v45  ;;  %v141_v31 = vld [vmem:[#allocation2 + $0x3a8] sm:$0xff]  ;;  %v142_v32 = vld [vmem:[#allocation2 + $0x3b0] sm:$0xff]  ;;  %v262_v40 = vadd.f32 %v514_v18, %v128_v1  ;;  %v273_v57 = vadd.f32 %v514_v18, %v139_v25  ;;  %v274_v58 = vadd.f32 %v514_v18, %v140_v30 }
  0xbb   :  { %359 = vst [vmem:[#allocation5 + $0x248] sm:$0xff] %v231_v46  ;;  %360 = vst [vmem:[#allocation5 + $0x250] sm:$0xff] %v232_v47  ;;  %v143_v37 = vld [vmem:[#allocation2 + $0x3b8] sm:$0xff]  ;;  %v144_v38 = vld [vmem:[#allocation2 + $0x3c0] sm:$0xff]  ;;  %v266_v47 = vadd.f32 %v514_v18, %v132_v9  ;;  %v275_v59 = vadd.f32 %v514_v18, %v141_v31  ;;  %v276_v60 = vadd.f32 %v514_v18, %v142_v32 }
  0xbc   :  { %361 = vst [vmem:[#allocation5 + $0x258] sm:$0xff] %v233_v48  ;;  %362 = vst [vmem:[#allocation5 + $0x260] sm:$0xff] %v234_v53  ;;  %v145_v39 = vld [vmem:[#allocation2 + $0x3c8] sm:$0xff]  ;;  %v146_v44 = vld [vmem:[#allocation2 + $0x3d0] sm:$0xff]  ;;  %v267_v48 = vadd.f32 %v514_v18, %v133_v10 }
  0xbd   :  { %363 = vst [vmem:[#allocation5 + $0x268] sm:$0xff] %v235_v54  ;;  %364 = vst [vmem:[#allocation5 + $0x270] sm:$0xff] %v236_v55  ;;  %v147_v45 = vld [vmem:[#allocation2 + $0x3d8] sm:$0xff]  ;;  %v148_v46 = vld [vmem:[#allocation2 + $0x3e0] sm:$0xff]  ;;  %v270_v54 = vadd.f32 %v514_v18, %v136_v17  ;;  %v271_v55 = vadd.f32 %v514_v18, %v137_v23 }
  0xbe   :  { %365 = vst [vmem:[#allocation5 + $0x278] sm:$0xff] %v237_v56  ;;  %366 = vst [vmem:[#allocation5 + $0x280] sm:$0xff] %v238_v61  ;;  %v149_v51 = vld [vmem:[#allocation2 + $0x3e8] sm:$0xff]  ;;  %v150_v52 = vld [vmem:[#allocation2 + $0x3f0] sm:$0xff]  ;;  %v272_v56 = vadd.f32 %v514_v18, %v138_v24  ;;  %v277_v61 = vadd.f32 %v514_v18, %v143_v37  ;;  %v281_v1 = vadd.f32 %v514_v18, %v147_v45 }
  0xbf   :  { %367 = vst [vmem:[#allocation5 + $0x288] sm:$0xff] %v239_v62  ;;  %368 = vst [vmem:[#allocation5 + $0x290] sm:$0xff] %v240_v63  ;;  %v151_v53 = vld [vmem:[#allocation2 + $0x3f8] sm:$0xff]  ;;  %v278_v62 = vadd.f32 %v514_v18, %v144_v38  ;;  %v279_v63 = vadd.f32 %v514_v18, %v145_v39  ;;  %v282_v2 = vadd.f32 %v514_v18, %v148_v46 }
  0xc0   :  { %369 = vst [vmem:[#allocation5 + $0x298] sm:$0xff] %v241_v0  ;;  %370 = vst [vmem:[#allocation5 + $0x2a0] sm:$0xff] %v242_v4  ;;  %v280_v0 = vadd.f32 %v514_v18, %v146_v44  ;;  %v283_v3 = vadd.f32 %v514_v18, %v149_v51  ;;  %v284_v4 = vadd.f32 %v514_v18, %v150_v52 }
  0xc1   :  { %371 = vst [vmem:[#allocation5 + $0x2a8] sm:$0xff] %v243_v5  ;;  %372 = vst [vmem:[#allocation5 + $0x2b0] sm:$0xff] %v244_v6  ;;  %v285_v5 = vadd.f32 %v514_v18, %v151_v53 }
  0xc2   :  { %373 = vst [vmem:[#allocation5 + $0x2b8] sm:$0xff] %v245_v7  ;;  %374 = vst [vmem:[#allocation5 + $0x2c0] sm:$0xff] %v246_v11 }
  0xc3   :  { %375 = vst [vmem:[#allocation5 + $0x2c8] sm:$0xff] %v247_v12  ;;  %376 = vst [vmem:[#allocation5 + $0x2d0] sm:$0xff] %v248_v13 }
  0xc4   :  { %377 = vst [vmem:[#allocation5 + $0x2d8] sm:$0xff] %v249_v14  ;;  %378 = vst [vmem:[#allocation5 + $0x2e0] sm:$0xff] %v250_v19 }
  0xc5   :  { %379 = vst [vmem:[#allocation5 + $0x2e8] sm:$0xff] %v251_v20  ;;  %380 = vst [vmem:[#allocation5 + $0x2f0] sm:$0xff] %v252_v21 }
  0xc6   :  { %381 = vst [vmem:[#allocation5 + $0x2f8] sm:$0xff] %v253_v22  ;;  %382 = vst [vmem:[#allocation5 + $0x300] sm:$0xff] %v254_v26 }
  0xc7   :  { %383 = vst [vmem:[#allocation5 + $0x308] sm:$0xff] %v255_v27  ;;  %384 = vst [vmem:[#allocation5 + $0x310] sm:$0xff] %v256_v28 }
  0xc8   :  { %385 = vst [vmem:[#allocation5 + $0x318] sm:$0xff] %v257_v29  ;;  %386 = vst [vmem:[#allocation5 + $0x320] sm:$0xff] %v258_v33 }
  0xc9   :  { %387 = vst [vmem:[#allocation5 + $0x328] sm:$0xff] %v259_v34  ;;  %388 = vst [vmem:[#allocation5 + $0x330] sm:$0xff] %v260_v35 }
  0xca   :  { %389 = vst [vmem:[#allocation5 + $0x338] sm:$0xff] %v261_v36  ;;  %390 = vst [vmem:[#allocation5 + $0x340] sm:$0xff] %v262_v40 }
  0xcb   :  { %391 = vst [vmem:[#allocation5 + $0x348] sm:$0xff] %v263_v41  ;;  %392 = vst [vmem:[#allocation5 + $0x350] sm:$0xff] %v264_v42 }
  0xcc   :  { %393 = vst [vmem:[#allocation5 + $0x358] sm:$0xff] %v265_v43  ;;  %394 = vst [vmem:[#allocation5 + $0x360] sm:$0xff] %v266_v47 }
  0xcd   :  { %395 = vst [vmem:[#allocation5 + $0x368] sm:$0xff] %v267_v48  ;;  %396 = vst [vmem:[#allocation5 + $0x370] sm:$0xff] %v268_v49 }
  0xce   :  { %397 = vst [vmem:[#allocation5 + $0x378] sm:$0xff] %v269_v50  ;;  %398 = vst [vmem:[#allocation5 + $0x380] sm:$0xff] %v270_v54 }
  0xcf   :  { %399 = vst [vmem:[#allocation5 + $0x388] sm:$0xff] %v271_v55  ;;  %400 = vst [vmem:[#allocation5 + $0x390] sm:$0xff] %v272_v56 }
  0xd0   :  { %401 = vst [vmem:[#allocation5 + $0x398] sm:$0xff] %v273_v57  ;;  %402 = vst [vmem:[#allocation5 + $0x3a0] sm:$0xff] %v274_v58 }
  0xd1   :  { %403 = vst [vmem:[#allocation5 + $0x3a8] sm:$0xff] %v275_v59  ;;  %404 = vst [vmem:[#allocation5 + $0x3b0] sm:$0xff] %v276_v60 }
  0xd2   :  { %405 = vst [vmem:[#allocation5 + $0x3b8] sm:$0xff] %v277_v61  ;;  %406 = vst [vmem:[#allocation5 + $0x3c0] sm:$0xff] %v278_v62 }
  0xd3   :  { %407 = vst [vmem:[#allocation5 + $0x3c8] sm:$0xff] %v279_v63  ;;  %408 = vst [vmem:[#allocation5 + $0x3d0] sm:$0xff] %v280_v0 }
  0xd4   :  { %409 = vst [vmem:[#allocation5 + $0x3d8] sm:$0xff] %v281_v1  ;;  %410 = vst [vmem:[#allocation5 + $0x3e0] sm:$0xff] %v282_v2 }
  0xd5   :  { %411 = vst [vmem:[#allocation5 + $0x3e8] sm:$0xff] %v283_v3  ;;  %412 = vst [vmem:[#allocation5 + $0x3f0] sm:$0xff] %v284_v4 }
  0xd6   :  { %413 = vst [vmem:[#allocation5 + $0x3f8] sm:$0xff] %v285_v5 }
  0xd7   :  { %466 = shalt.err (!%p463_p12)
}
  0xd8   :  { %s467_s26 = scalar_lea.hbm %s838_s2, 16384 }
  0xd9   :  { %p468_p13 = scmp.ne.s32.totalorder %s838_s2, %s467_s26  ;;  %p471_p0 = scmp.lt.u32.totalorder %s467_s26, %s838_s2 }
  0xdb   :  { %p473_p1 = pnand %p471_p0, %p468_p13 }
  0xdd   :  { %476 = shalt.err (!%p473_p1)
}
  0xde   :  { %423 = dma.vmem_to_hbm [thread:$0]  %s421_s1, 16384, %s838_s2, [#allocation4]  }
  0xdf   :  { %479 = dma.done.wait [#allocation4], 16384  }
  0xe0   :  { %480 = vsyncadd [#allocation4], 4294950912 }
  0xe1   :  { %427 = vsyncpa [#allocation3], 1 }
  0xe2   :  { %428 = vsyncpa [#allocation4], 1 }

</bundles_post_ra>
